<compile_context>
chip_gen: v5e
topology: v5e:2x2
jax: 0.10.0
libtpu: 0.0.40
codegen_flags: <defaults>
</compile_context>

<pallas_src>
import functools

import jax
import jax.numpy as jnp
from jax.experimental import pallas as pl
from jax.experimental.pallas import tpu as pltpu

_LANE = 128


def _round_up(x, m):
    return ((x + m - 1) // m) * m


def _cdiv(a, b):
    return -(-a // b)


def _pad2(a, rows, cols):
    return jnp.pad(a, ((0, rows - a.shape[0]), (0, cols - a.shape[1])))


def _const_spec(shape):
    nd = len(shape)
    return pl.BlockSpec(shape, lambda *_, _nd=nd: (0,) * _nd)


def _vmem_budget_bytes():
    """Generation-aware scoped-VMEM limit and working-set budget."""
    cap = None
    try:
        cap = getattr(pltpu.get_tpu_info(), "vmem_capacity_bytes", None)
    except Exception:
        cap = None
    if not cap:
        cap = 64 * 1024 * 1024                 # conservative: v7x per-TensorCore
    limit = max(32 * 1024 * 1024, int(cap) * 3 // 4)   # ~48 MiB v7x, ~96 MiB v5e/v6e
    budget = max(24 * 1024 * 1024, limit - 8 * 1024 * 1024)
    return budget, limit


# --------------------------------------------------------------------------
# Kernels (channels-first, weight stationary; tiles over spatial lanes)
# --------------------------------------------------------------------------
def _wx_bias_kernel(x_ref, w_ref, b_ref, o_ref):
    # o = W @ x + b      (s == 16, and s == 32 after host-side conv2 folding)
    acc = jnp.dot(w_ref[...], x_ref[0], preferred_element_type=jnp.float32)
    o_ref[0] = (acc + b_ref[...]).astype(o_ref.dtype)


def _wx_fused_kernel(x_ref, w1_ref, b1_ref, w2_ref, b2_ref, o_ref):
    # conv1 (1x1) + ConvTranspose2d(k=stride=k): two chained matmuls,
    # the intermediate y stays resident in VMEM/vregs.
    y = jnp.dot(w1_ref[...], x_ref[0], preferred_element_type=jnp.float32)
    y = y + b1_ref[...]
    z = jnp.dot(w2_ref[...], y.astype(jnp.bfloat16),
                preferred_element_type=jnp.float32)
    o_ref[0] = (z + b2_ref[...]).astype(o_ref.dtype)


# --------------------------------------------------------------------------
# Launcher: grid = (batch, spatial tiles)
# --------------------------------------------------------------------------
def _run_channels_first(kernel, x3, residents, n_out, out_dtype,
                        extra_f32_cols=0):
    """x3: (B, K, S) bf16 (channels already padded).  Tiles the spatial dim."""
    B, K, S = x3.shape
    budget, limit = _vmem_budget_bytes()

    resident_bytes = sum(int(r.size) * r.dtype.itemsize for r in residents)
    out_isz = jnp.dtype(out_dtype).itemsize
    per_col = 2 * K + out_isz * n_out          # streamed bytes per spatial column

    def need(t):
        # double-buffered residents AND streams, plus f32 intermediates/acc
        return (2 * resident_bytes + 2 * t * per_col
                + 4 * t * (n_out + extra_f32_cols))

    tn = 1024 if budget >= 64 * 1024 * 1024 else 512
    while tn > _LANE and need(tn) > budget:
        tn //= 2
    tn = min(tn, _round_up(S, _LANE))
    # guarantee >= 2 grid steps when possible (megacore sharding + pipelining)
    if B * _cdiv(S, tn) < 2 and S > _LANE:
        tn = _round_up(_cdiv(S, 2), _LANE)

    Sp = _round_up(S, tn)
    if Sp != S:
        x3 = jnp.pad(x3, ((0, 0), (0, 0), (0, Sp - S)))
    grid = (B, Sp // tn)

    in_specs = [pl.BlockSpec((1, K, tn), lambda b, t: (b, 0, t))]
    in_specs += [_const_spec(r.shape) for r in residents]

    out = pl.pallas_call(
        kernel,
        out_shape=jax.ShapeDtypeStruct((B, n_out, Sp), out_dtype),
        grid_spec=pltpu.PrefetchScalarGridSpec(
            num_scalar_prefetch=0,
            grid=grid,
            in_specs=in_specs,
            out_specs=pl.BlockSpec((1, n_out, tn), lambda b, t: (b, 0, t)),
        ),
        compiler_params=pltpu.CompilerParams(
            dimension_semantics=("parallel", "parallel"),
            vmem_limit_bytes=limit,
        ),
    )(x3, *residents)
    return out[:, :, :S] if Sp != S else out


# --------------------------------------------------------------------------
# Parameters (same layouts as the PyTorch module)
# --------------------------------------------------------------------------
def init_resample_params(key, s, emb_dim, resample_dim):
    assert s in (4, 8, 16, 32)
    k1, k2, k3, k4 = jax.random.split(key, 4)
    params = {
        # nn.Conv2d(emb_dim, resample_dim, 1): weight (Cout, Cin, 1, 1)
        "w1": 0.1 * jax.random.normal(k1, (resample_dim, emb_dim, 1, 1), jnp.float32),
        "b1": 0.1 * jax.random.normal(k2, (resample_dim,), jnp.float32),
    }
    if s in (4, 8):
        k = 4 if s == 4 else 2
        # nn.ConvTranspose2d weight: (Cin, Cout, kH, kW)
        params["w2"] = 0.1 * jax.random.normal(
            k3, (resample_dim, resample_dim, k, k), jnp.float32)
        params["b2"] = 0.1 * jax.random.normal(k4, (resample_dim,), jnp.float32)
    elif s == 32:
        # nn.Conv2d weight: (Cout, Cin, 2, 2)
        params["w2"] = 0.1 * jax.random.normal(
            k3, (resample_dim, resample_dim, 2, 2), jnp.float32)
        params["b2"] = 0.1 * jax.random.normal(k4, (resample_dim,), jnp.float32)
    # s == 16 -> nn.Identity
    return params


# --------------------------------------------------------------------------
# Forward pass (NCHW in / NCHW out, same semantics as Resample.forward)
# --------------------------------------------------------------------------
def resample_forward(params, x, s, out_dtype=jnp.bfloat16):
    assert s in (4, 8, 16, 32)
    B, Cin, H, W = x.shape
    Cout = params["b1"].shape[0]
    Kp = _round_up(Cin, _LANE)    # padded emb_dim
    Cp = _round_up(Cout, _LANE)   # padded resample_dim

    w1 = params["w1"].reshape(Cout, Cin)                        # (Cout, Cin)
    b1 = params["b1"]

    if s == 32:
        # conv1 then Conv2d(k=2,s=2): fold conv2 into conv1 on the host so the
        # kernel is a single matmul over a space-to-depth input.
        assert H % 2 == 0 and W % 2 == 0, "Conv2d(k=2,s=2) requires even H, W"
        Ho, Wo = H // 2, W // 2
        S = Ho * Wo
        xp = x.reshape(B, Cin, Ho, 2, Wo, 2)
        xp = jnp.transpose(xp, (0, 3, 5, 1, 2, 4))      # (B, a, b, Cin, Ho, Wo)
        xp = xp.reshape(B, 4, Cin, S)
        xp = jnp.pad(xp, ((0, 0), (0, 0), (0, Kp - Cin), (0, 0)))
        x3 = xp.reshape(B, 4 * Kp, S).astype(jnp.bfloat16)

        w2 = params["w2"]                                # (Cout, Cout, 2, 2)
        blocks, b_fold = [], params["b2"]
        for a in range(2):
            for bq in range(2):                          # patch pos p = a*2 + bq
                wp = w2[:, :, a, bq] @ w1                # (Cout, Cin)
                blocks.append(_pad2(wp, Cp, Kp))
                b_fold = b_fold + w2[:, :, a, bq] @ b1
        wf = jnp.concatenate(blocks, axis=1).astype(jnp.bfloat16)   # (Cp, 4*Kp)
        bf = _pad2(b_fold.reshape(Cout, 1), Cp, 1).astype(jnp.float32)

        out = _run_channels_first(_wx_bias_kernel, x3, [wf, bf], Cp, out_dtype)
        return out[:, :Cout, :].reshape(B, Cout, Ho, Wo)     # already NCHW

    # s in (4, 8, 16): x[b] viewed channels-first -> pure reshape, no transpose
    S = H * W
    x3 = x.reshape(B, Cin, S)
    x3 = jnp.pad(x3, ((0, 0), (0, Kp - Cin), (0, 0))).astype(jnp.bfloat16)

    w1p = _pad2(w1, Cp, Kp).astype(jnp.bfloat16)
    b1p = _pad2(b1.reshape(Cout, 1), Cp, 1).astype(jnp.float32)

    if s == 16:
        out = _run_channels_first(_wx_bias_kernel, x3, [w1p, b1p], Cp, out_dtype)
        return out[:, :Cout, :].reshape(B, Cout, H, W)        # already NCHW

    # s in (4, 8): conv1 + ConvTranspose2d(k=stride=k, pad=0), fused
    k = 4 if s == 4 else 2
    N = Cout * k * k
    Np = _round_up(N, _LANE)
    # ConvTranspose2d weight (Cin, Cout, kH, kW) -> rows (co, kh, kw), cols ci
    w2 = jnp.transpose(params["w2"], (1, 2, 3, 0)).reshape(N, Cout)
    w2p = _pad2(w2, Np, Cp).astype(jnp.bfloat16)
    b2 = jnp.repeat(params["b2"], k * k).reshape(N, 1)        # bias per (co,a,b)
    b2p = _pad2(b2, Np, 1).astype(jnp.float32)

    z = _run_channels_first(_wx_fused_kernel, x3, [w1p, b1p, w2p, b2p],
                            Np, jnp.bfloat16, extra_f32_cols=Cp)
    z = z[:, :N, :].reshape(B, Cout, k, k, H, W)
    # pixel shuffle (inherent to ConvTranspose2d), done in bf16:
    # (co, kh, kw, h, w) -> (co, h, kh, w, kw)
    z = jnp.transpose(z, (0, 1, 4, 2, 5, 3)).reshape(B, Cout, H * k, W * k)
    return z.astype(out_dtype)


# --------------------------------------------------------------------------
# Pure-JAX f32 reference (no Pallas) for correctness checking
# --------------------------------------------------------------------------
def reference_forward(params, x, s):
    Cout = params["b1"].shape[0]
    w1 = params["w1"].reshape(Cout, -1)
    y = jnp.einsum("nchw,oc->nohw", x, w1) + params["b1"][None, :, None, None]
    if s == 16:
        return y
    if s in (4, 8):
        k = 4 if s == 4 else 2
        z = jnp.einsum("nihw,ioab->nohawb", y, params["w2"])
        N_, Co, Hh, _, Ww, _ = z.shape
        return z.reshape(N_, Co, Hh * k, Ww * k) + params["b2"][None, :, None, None]
    z = jax.lax.conv_general_dilated(
        y, params["w2"], window_strides=(2, 2), padding="VALID",
        dimension_numbers=("NCHW", "OIHW", "NCHW"))
    return z + params["b2"][None, :, None, None]


if __name__ == "__main__":
    key = jax.random.PRNGKey(0)
    B, emb_dim, resample_dim, H, W = 2, 32, 32, 8, 8
    kx, kp = jax.random.split(key)
    x = jax.random.normal(kx, (B, emb_dim, H, W), jnp.float32)

    @functools.partial(jax.jit, static_argnums=(2,))
    def fwd(p, xx, s):
        return resample_forward(p, xx, s)     # default out_dtype = bf16

    ok = True
    for s in (4, 8, 16, 32):
        params = init_resample_params(jax.random.fold_in(kp, s), s, emb_dim, resample_dim)
        out = jax.block_until_ready(fwd(params, x, s))
        ref = reference_forward(params, x, s)
        # bf16 MXU path / bf16 output vs f32 reference: bf16-level tolerance
        good = (out.shape == ref.shape) and bool(
            jnp.allclose(out.astype(jnp.float32), ref, atol=5e-2, rtol=5e-2))
        if not good:
            ok = False
            print(f"s={s}: mismatch, max abs diff = "
                  f"{float(jnp.max(jnp.abs(out.astype(jnp.float32) - ref))):.4e}")
    if ok:
        print("KERNEL_OK")
</pallas_src>

<mosaic_0001>
module attributes {stable_mosaic.version = 11 : i64} {
  func.func @_wx_fused_kernel(%arg0: i32, %arg1: i32, %arg2: memref<1x128x128xbf16, #tpu.memory_space<vmem>>, %arg3: memref<128x128xbf16, #tpu.memory_space<vmem>>, %arg4: memref<128x1xf32, #tpu.memory_space<vmem>>, %arg5: memref<512x128xbf16, #tpu.memory_space<vmem>>, %arg6: memref<512x1xf32, #tpu.memory_space<vmem>>, %arg7: memref<1x512x128xbf16, #tpu.memory_space<vmem>>) attributes {dimension_semantics = [#tpu.dimension_semantics<parallel>, #tpu.dimension_semantics<parallel>], iteration_bounds = array<i64: 2, 1>, scalar_prefetch = 0 : i64, scratch_operands = 0 : i64, tpu.core_type = #tpu.core_type<tc>, window_params = [{transform_indices = @transform_0, window_bounds = array<i64: 1, 128, 128>}, {pipeline_mode = #tpu.pipeline_mode<synchronous>, transform_indices = @transform_1, window_bounds = array<i64: 128, 128>}, {pipeline_mode = #tpu.pipeline_mode<synchronous>, transform_indices = @transform_2, window_bounds = array<i64: 128, 1>}, {pipeline_mode = #tpu.pipeline_mode<synchronous>, transform_indices = @transform_3, window_bounds = array<i64: 512, 128>}, {pipeline_mode = #tpu.pipeline_mode<synchronous>, transform_indices = @transform_4, window_bounds = array<i64: 512, 1>}, {transform_indices = @transform_5, window_bounds = array<i64: 1, 512, 128>}]} {
    %c0 = arith.constant 0 : index
    %c0_0 = arith.constant 0 : index
    %0 = vector.load %arg3[%c0, %c0_0] : memref<128x128xbf16, #tpu.memory_space<vmem>>, vector<128x128xbf16>
    %c0_1 = arith.constant 0 : index
    %c0_2 = arith.constant 0 : index
    %c0_3 = arith.constant 0 : index
    %1 = vector.load %arg2[%c0_1, %c0_2, %c0_3] : memref<1x128x128xbf16, #tpu.memory_space<vmem>>, vector<1x128x128xbf16>
    %2 = vector.shape_cast %1 : vector<1x128x128xbf16> to vector<128x128xbf16>
    %cst = arith.constant dense<0.000000e+00> : vector<128x128xf32>
    %3 = tpu.matmul %0, %2, %cst {dimension_numbers = #tpu.dot_dimension_numbers<[1], [0], [0], [1], [0, 0, 1, 1], [], []>} : vector<128x128xbf16>, vector<128x128xbf16>, vector<128x128xf32> -> vector<128x128xf32>
    %c0_4 = arith.constant 0 : index
    %c0_5 = arith.constant 0 : index
    %4 = vector.load %arg4[%c0_4, %c0_5] : memref<128x1xf32, #tpu.memory_space<vmem>>, vector<128x1xf32>
    %5 = vector.broadcast %4 : vector<128x1xf32> to vector<128x128xf32>
    %6 = arith.addf %3, %5 : vector<128x128xf32>
    %c0_6 = arith.constant 0 : index
    %c0_7 = arith.constant 0 : index
    %7 = vector.load %arg5[%c0_6, %c0_7] : memref<512x128xbf16, #tpu.memory_space<vmem>>, vector<512x128xbf16>
    %8 = arith.truncf %6 : vector<128x128xf32> to vector<128x128xbf16>
    %cst_8 = arith.constant dense<0.000000e+00> : vector<512x128xf32>
    %9 = tpu.matmul %7, %8, %cst_8 {dimension_numbers = #tpu.dot_dimension_numbers<[1], [0], [0], [1], [0, 0, 1, 1], [], []>} : vector<512x128xbf16>, vector<128x128xbf16>, vector<512x128xf32> -> vector<512x128xf32>
    %c0_9 = arith.constant 0 : index
    %c0_10 = arith.constant 0 : index
    %10 = vector.load %arg6[%c0_9, %c0_10] : memref<512x1xf32, #tpu.memory_space<vmem>>, vector<512x1xf32>
    %11 = vector.broadcast %10 : vector<512x1xf32> to vector<512x128xf32>
    %12 = arith.addf %9, %11 : vector<512x128xf32>
    %13 = arith.truncf %12 : vector<512x128xf32> to vector<512x128xbf16>
    %c0_11 = arith.constant 0 : index
    %c0_12 = arith.constant 0 : index
    %c0_13 = arith.constant 0 : index
    %14 = vector.load %arg7[%c0_11, %c0_12, %c0_13] : memref<1x512x128xbf16, #tpu.memory_space<vmem>>, vector<1x512x128xbf16>
    %15 = vector.shape_cast %14 : vector<1x512x128xbf16> to vector<512x128xbf16>
    %16 = vector.shape_cast %13 : vector<512x128xbf16> to vector<1x512x128xbf16>
    tpu.vector_store %arg7[%c0_11, %c0_12, %c0_13], %16 {strides = array<i32>} : memref<1x512x128xbf16, #tpu.memory_space<vmem>>, vector<1x512x128xbf16>,
    return
  }
  func.func @transform_0(%arg0: i32, %arg1: i32) -> (i32, i32, i32) {
    %c0_i32 = arith.constant 0 : i32
    %c0_i32_0 = arith.constant 0 : i32
    return %arg0, %c0_i32, %arg1 : i32, i32, i32
  }
  func.func @transform_1(%arg0: i32, %arg1: i32) -> (i32, i32) {
    %c0_i32 = arith.constant 0 : i32
    %c0_i32_0 = arith.constant 0 : i32
    %c0_i32_1 = arith.constant 0 : i32
    return %c0_i32, %c0_i32_0 : i32, i32
  }
  func.func @transform_2(%arg0: i32, %arg1: i32) -> (i32, i32) {
    %c0_i32 = arith.constant 0 : i32
    %c0_i32_0 = arith.constant 0 : i32
    %c0_i32_1 = arith.constant 0 : i32
    return %c0_i32, %c0_i32_0 : i32, i32
  }
  func.func @transform_3(%arg0: i32, %arg1: i32) -> (i32, i32) {
    %c0_i32 = arith.constant 0 : i32
    %c0_i32_0 = arith.constant 0 : i32
    %c0_i32_1 = arith.constant 0 : i32
    return %c0_i32, %c0_i32_0 : i32, i32
  }
  func.func @transform_4(%arg0: i32, %arg1: i32) -> (i32, i32) {
    %c0_i32 = arith.constant 0 : i32
    %c0_i32_0 = arith.constant 0 : i32
    %c0_i32_1 = arith.constant 0 : i32
    return %c0_i32, %c0_i32_0 : i32, i32
  }
  func.func @transform_5(%arg0: i32, %arg1: i32) -> (i32, i32, i32) {
    %c0_i32 = arith.constant 0 : i32
    %c0_i32_0 = arith.constant 0 : i32
    return %arg0, %c0_i32, %arg1 : i32, i32, i32
  }
}

</mosaic_0001>

<bundles_post_ra>
// kernel: fwd.1
= control target key start
LH: loop header
LB: loop body
LE: loop exit
PB: predicated region body
PF: predicated region fallthrough
CT: control target
= control target key end

     0   :  { %s2108_s18 = smov 0   ;;  %s2110_s19 = smov 0   ;;  %s2696_s0 = inlined_call_operand.vmem [shape: bf16[2,128,128], index: 0, kind: input, shape index: {}]   ;;  %s2697_s1 = inlined_call_operand.vmem [shape: bf16[128,128], index: 1, kind: input, shape index: {}]   ;;  %s2698_s2 = inlined_call_operand.vmem [shape: f32[128,1], index: 2, kind: input, shape index: {}]   ;;  %s2699_s3 = inlined_call_operand.vmem [shape: bf16[512,128], index: 3, kind: input, shape index: {}]   ;;  %s2700_s4 = inlined_call_operand.vmem [shape: f32[512,1], index: 4, kind: input, shape index: {}]   ;;  %s2701_s5 = inlined_call_operand.vmem [shape: bf16[2,512,128], index: 5, kind: output, shape index: {}]  }
   0x1   :  { %s2112_s20 = smov 0  }
   0x2 LB: > { %s27_s21 = sadd.s32 1, %s2071_s19  ;;  %p1561_p0 = scmp.ge.s32.totalorder %s2075_s20, 1  ;;  %s2075_s20 = sphi %s2112_s20, %s15_s20   ;;  %s2071_s19 = sphi %s2110_s19, %s2703_s19   ;;  %s2067_s18 = sphi %s2108_s18, %s2702_s18  }
   0x3   : > { %p29_p1 = scmp.ge.s32.totalorder %s27_s21, 2  ;;  %p206_p2 = scmp.lt.s32.totalorder %s2075_s20, 3 }
   0x5   : > { %s2705_s21 = smov (%p29_p1, %s27_s21), 0  ;;  %p207_p3 = pnand %p1561_p0, %p206_p2 }
   0x6   : > { %p240_p4 = scmp.lt.s32.totalorder (!%p207_p3), %s2067_s18, 1 }
   0x7   : > { %210 = sbr.rel (%p207_p3) target bundleno = 620 (0x26c), region = 40 }
   0xc   : > { %v292_v0 = vld [vmem:[%s2698_s2 + $0x20] sm:$0xff]  ;;  %v290_v1 = vld [vmem:[%s2698_s2 + $0x10] sm:$0xff]  ;;  %v2077_v3 = vmov 0   ;;  %s2707_s18 = smov (!%p240_p4, %s2067_s18), 1  ;;  %v293_v5 = vld [vmem:[%s2698_s2 + $0x28] sm:$0xff] }
   0xd   : > { %v288_v2 = vld [vmem:[%s2698_s2] sm:$0xff]  ;;  %2052 = vset.pattern.permute.xlu2 %v2077_v3  ;;  %2051 = vset.pattern.permute.xlu1 %v2077_v3  ;;  %s1760_s28 = sshll.u32 %s2707_s18, 6  ;;  %v291_v6 = vld [vmem:[%s2698_s2 + $0x18] sm:$0xff]  ;;  %v289_v7 = vld [vmem:[%s2698_s2 + $0x8] sm:$0xff]  ;;  %s1761_s29 = sshll.u32 %s2707_s18, 8 }
   0xe   : > { %2050 = vset.pattern.permute.xlu0 %v2077_v3  ;;  %326 = vperm.xlu2 %2052, %v292_v0   ;;  %s2141_s6 = scalar_lea.vmem %s2696_s0, %s1760_s28  ;;  %v296_v10 = vld [vmem:[%s2698_s2 + $0x40] sm:$0xff]  ;;  %v295_v11 = vld [vmem:[%s2698_s2 + $0x38] sm:$0xff]  ;;  %v294_v12 = vld [vmem:[%s2698_s2 + $0x30] sm:$0xff]  ;;  %s2601_s8 = scalar_lea.vmem %s2701_s5, %s1761_s29 }
   0xf   : > { %316 = vperm.xlu1 %2051, %v290_v1   ;;  %306 = vperm.xlu0 %2050, %v288_v2   ;;  %v1777_v4 = vld [vmem:[%s2141_s6 + $0x38] sm:$0xff]  ;;  %v1776_v8 = vld [vmem:[%s2141_s6 + $0x30] sm:$0xff]  ;;  %v1775_v9 = vld [vmem:[%s2141_s6 + $0x28] sm:$0xff] }
  0x10   : > { %480 = vmatpush.bf16.msra.mxu0 %v1777_v4  ;;  %v1774_v13 = vld [vmem:[%s2141_s6 + $0x20] sm:$0xff]  ;;  %v1773_v14 = vld [vmem:[%s2141_s6 + $0x18] sm:$0xff]  ;;  %v298_v16 = vld [vmem:[%s2698_s2 + $0x50] sm:$0xff] }
  0x11   : > { %v299_v15 = vld [vmem:[%s2698_s2 + $0x58] sm:$0xff]  ;;  %v297_v17 = vld [vmem:[%s2698_s2 + $0x48] sm:$0xff]  ;;  %v1772_v18 = vld [vmem:[%s2141_s6 + $0x10] sm:$0xff] }
  0x12   : > { %v1771_v19 = vld [vmem:[%s2141_s6 + $0x8] sm:$0xff]  ;;  %v302_v20 = vld [vmem:[%s2698_s2 + $0x70] sm:$0xff]  ;;  %v300_v22 = vld [vmem:[%s2698_s2 + $0x60] sm:$0xff] }
  0x13   : > { %v301_v21 = vld [vmem:[%s2698_s2 + $0x68] sm:$0xff]  ;;  %v1770_v23 = vld [vmem:[%s2141_s6] sm:$0xff]  ;;  %v303_v27 = vld [vmem:[%s2698_s2 + $0x78] sm:$0xff] }
  0x14   : > { %481 = vmatpush.bf16.msra.mxu0 %v1776_v8  ;;  %v1762_v24 = vld [vmem:[%s2697_s1] sm:$0xff]  ;;  %v602_v25 = vld [vmem:[%s2700_s4 + $0x8] sm:$0xff]  ;;  %v604_v29 = vld [vmem:[%s2700_s4 + $0x18] sm:$0xff] }
  0x15   : > { %v601_v26 = vld [vmem:[%s2700_s4] sm:$0xff]  ;;  %v603_v30 = vld [vmem:[%s2700_s4 + $0x10] sm:$0xff]  ;;  %v1763_v31 = vld [vmem:[%s2697_s1 + $0x8] sm:$0xff] }
  0x16   : > { %331 = vperm.xlu2 %2052, %v293_v5   ;;  %v605_v28 = vld [vmem:[%s2700_s4 + $0x20] sm:$0xff]  ;;  %v608_v32 = vld [vmem:[%s2700_s4 + $0x38] sm:$0xff]  ;;  %v607_v33 = vld [vmem:[%s2700_s4 + $0x30] sm:$0xff] }
  0x17   : > { %321 = vperm.xlu1 %2051, %v291_v6   ;;  %311 = vperm.xlu0 %2050, %v289_v7   ;;  %v606_v34 = vld [vmem:[%s2700_s4 + $0x28] sm:$0xff]  ;;  %v611_v35 = vld [vmem:[%s2700_s4 + $0x50] sm:$0xff]  ;;  %v609_v37 = vld [vmem:[%s2700_s4 + $0x40] sm:$0xff] }
  0x18   : > { %482 = vmatpush.bf16.msra.mxu0 %v1775_v9  ;;  %v610_v36 = vld [vmem:[%s2700_s4 + $0x48] sm:$0xff]  ;;  %v1764_v38 = vld [vmem:[%s2697_s1 + $0x10] sm:$0xff]  ;;  %v613_v40 = vld [vmem:[%s2700_s4 + $0x60] sm:$0xff] }
  0x19   : > { %v614_v39 = vld [vmem:[%s2700_s4 + $0x68] sm:$0xff]  ;;  %v612_v41 = vld [vmem:[%s2700_s4 + $0x58] sm:$0xff]  ;;  %v617_v42 = vld [vmem:[%s2700_s4 + $0x80] sm:$0xff] }
  0x1a   : > { %v616_v43 = vld [vmem:[%s2700_s4 + $0x78] sm:$0xff]  ;;  %v615_v44 = vld [vmem:[%s2700_s4 + $0x70] sm:$0xff]  ;;  %v618_v48 = vld [vmem:[%s2700_s4 + $0x88] sm:$0xff] }
  0x1b   : > { %v1765_v45 = vld [vmem:[%s2697_s1 + $0x18] sm:$0xff]  ;;  %v619_v47 = vld [vmem:[%s2700_s4 + $0x90] sm:$0xff]  ;;  %v622_v50 = vld [vmem:[%s2700_s4 + $0xa8] sm:$0xff] }
  0x1c   : > { %483 = vmatpush.bf16.msra.mxu0 %v1774_v13  ;;  %v620_v46 = vld [vmem:[%s2700_s4 + $0x98] sm:$0xff]  ;;  %v623_v49 = vld [vmem:[%s2700_s4 + $0xb0] sm:$0xff]  ;;  %v621_v51 = vld [vmem:[%s2700_s4 + $0xa0] sm:$0xff] }
  0x1d   : > { %v1766_v52 = vld [vmem:[%s2697_s1 + $0x20] sm:$0xff]  ;;  %v626_v53 = vld [vmem:[%s2700_s4 + $0xc8] sm:$0xff]  ;;  %v624_v55 = vld [vmem:[%s2700_s4 + $0xb8] sm:$0xff] }
  0x1e   : > { %346 = vperm.xlu2 %2052, %v296_v10   ;;  %v625_v54 = vld [vmem:[%s2700_s4 + $0xc0] sm:$0xff]  ;;  %v628_v57 = vld [vmem:[%s2700_s4 + $0xd8] sm:$0xff]  ;;  %v627_v58 = vld [vmem:[%s2700_s4 + $0xd0] sm:$0xff] }
  0x1f   : > { %341 = vperm.xlu1 %2051, %v295_v11   ;;  %336 = vperm.xlu0 %2050, %v294_v12   ;;  %v629_v56 = vld [vmem:[%s2700_s4 + $0xe0] sm:$0xff]  ;;  %v1767_v59 = vld [vmem:[%s2697_s1 + $0x28] sm:$0xff]  ;;  %v632_v60 = vld [vmem:[%s2700_s4 + $0xf8] sm:$0xff] }
  0x20   : > { %484 = vmatpush.bf16.msra.mxu0 %v1773_v14  ;;  %v631_v61 = vld [vmem:[%s2700_s4 + $0xf0] sm:$0xff]  ;;  %v630_v62 = vld [vmem:[%s2700_s4 + $0xe8] sm:$0xff]  ;;  %v633_v1 = vld [vmem:[%s2700_s4 + $0x100] sm:$0xff] }
  0x21   : > { %v635_v63 = vld [vmem:[%s2700_s4 + $0x110] sm:$0xff]  ;;  %v634_v0 = vld [vmem:[%s2700_s4 + $0x108] sm:$0xff]  ;;  %v637_v4 = vld [vmem:[%s2700_s4 + $0x120] sm:$0xff] }
  0x22   : > { %v1768_v2 = vld [vmem:[%s2697_s1 + $0x30] sm:$0xff]  ;;  %v638_v3 = vld [vmem:[%s2700_s4 + $0x128] sm:$0xff]  ;;  %v636_v5 = vld [vmem:[%s2700_s4 + $0x118] sm:$0xff] }
  0x23   : > { %v641_v6 = vld [vmem:[%s2700_s4 + $0x140] sm:$0xff]  ;;  %v640_v7 = vld [vmem:[%s2700_s4 + $0x138] sm:$0xff]  ;;  %v639_v8 = vld [vmem:[%s2700_s4 + $0x130] sm:$0xff] }
  0x24   : > { %485 = vmatpush.bf16.msra.mxu0 %v1772_v18  ;;  %v1769_v9 = vld [vmem:[%s2697_s1 + $0x38] sm:$0xff]  ;;  %v643_v11 = vld [vmem:[%s2700_s4 + $0x150] sm:$0xff]  ;;  %v642_v12 = vld [vmem:[%s2700_s4 + $0x148] sm:$0xff] }
  0x25   : > { %v644_v10 = vld [vmem:[%s2700_s4 + $0x158] sm:$0xff]  ;;  %v647_v13 = vld [vmem:[%s2700_s4 + $0x170] sm:$0xff]  ;;  %v646_v14 = vld [vmem:[%s2700_s4 + $0x168] sm:$0xff] }
  0x26   : > { %361 = vperm.xlu2 %2052, %v299_v15   ;;  %v645_v15 = vld [vmem:[%s2700_s4 + $0x160] sm:$0xff] }
  0x27   : > { %356 = vperm.xlu1 %2051, %v298_v16   ;;  %351 = vperm.xlu0 %2050, %v297_v17  }
  0x28   : > { %486 = vmatpush.bf16.msra.mxu0 %v1771_v19  ;;  %v650_v19 = vld [vmem:[%s2700_s4 + $0x188] sm:$0xff] }
  0x2c   : > { %487 = vmatpush.bf16.msra.mxu0 %v1770_v23 }
  0x2e   : > { %376 = vperm.xlu2 %2052, %v302_v20   ;;  %v649_v20 = vld [vmem:[%s2700_s4 + $0x180] sm:$0xff] }
  0x2f   : > { %371 = vperm.xlu1 %2051, %v301_v21   ;;  %366 = vperm.xlu0 %2050, %v300_v22   ;;  %v648_v21 = vld [vmem:[%s2700_s4 + $0x178] sm:$0xff] }
  0x30   : > { %488 = vmatmul.bf16.vlgmr.msra.gmra.mxu0 %v1762_v24 }
  0x36   : > { %672 = vperm.xlu2 %2052, %v602_v25  }
  0x37   : > { %667 = vperm.xlu1 %2051, %v601_v26   ;;  %381 = vperm.xlu0 %2050, %v303_v27   ;;  %v653_v26 = vld [vmem:[%s2700_s4 + $0x1a0] sm:$0xff]  ;;  %v652_v27 = vld [vmem:[%s2700_s4 + $0x198] sm:$0xff] }
  0x3e   : > { %687 = vperm.xlu2 %2052, %v605_v28   ;;  %v651_v28 = vld [vmem:[%s2700_s4 + $0x190] sm:$0xff] }
  0x3f   : > { %682 = vperm.xlu1 %2051, %v604_v29   ;;  %677 = vperm.xlu0 %2050, %v603_v30  }
  0x40   : > { %493 = vmatmul.bf16.gmra.mxu0 %v1763_v31  ;;  %v656_v31 = vld [vmem:[%s2700_s4 + $0x1b8] sm:$0xff] }
  0x46   : > { %702 = vperm.xlu2 %2052, %v608_v32   ;;  %v655_v32 = vld [vmem:[%s2700_s4 + $0x1b0] sm:$0xff] }
  0x47   : > { %697 = vperm.xlu1 %2051, %v607_v33   ;;  %692 = vperm.xlu0 %2050, %v606_v34   ;;  %v654_v33 = vld [vmem:[%s2700_s4 + $0x1a8] sm:$0xff] }
  0x4e   : > { %717 = vperm.xlu2 %2052, %v611_v35  }
  0x4f   : > { %712 = vperm.xlu1 %2051, %v610_v36   ;;  %707 = vperm.xlu0 %2050, %v609_v37  }
  0x50   : > { %498 = vmatmul.bf16.gmra.mxu0 %v1764_v38 }
  0x56   : > { %732 = vperm.xlu2 %2052, %v614_v39   ;;  %v659_v39 = vld [vmem:[%s2700_s4 + $0x1d0] sm:$0xff] }
  0x57   : > { %727 = vperm.xlu1 %2051, %v613_v40   ;;  %722 = vperm.xlu0 %2050, %v612_v41   ;;  %v658_v40 = vld [vmem:[%s2700_s4 + $0x1c8] sm:$0xff]  ;;  %v657_v41 = vld [vmem:[%s2700_s4 + $0x1c0] sm:$0xff] }
  0x5e   : > { %747 = vperm.xlu2 %2052, %v617_v42  }
  0x5f   : > { %742 = vperm.xlu1 %2051, %v616_v43   ;;  %737 = vperm.xlu0 %2050, %v615_v44   ;;  %v662_v44 = vld [vmem:[%s2700_s4 + $0x1e8] sm:$0xff] }
  0x60   : > { %503 = vmatmul.bf16.gmra.mxu0 %v1765_v45  ;;  %v661_v45 = vld [vmem:[%s2700_s4 + $0x1e0] sm:$0xff] }
  0x66   : > { %762 = vperm.xlu2 %2052, %v620_v46   ;;  %v660_v46 = vld [vmem:[%s2700_s4 + $0x1d8] sm:$0xff] }
  0x67   : > { %757 = vperm.xlu1 %2051, %v619_v47   ;;  %752 = vperm.xlu0 %2050, %v618_v48  }
  0x68   : > { %v327_v42 = vpop.permute.xlu2 %326 }
  0x6e   : > { %777 = vperm.xlu2 %2052, %v623_v49  }
  0x6f   : > { %772 = vperm.xlu1 %2051, %v622_v50   ;;  %767 = vperm.xlu0 %2050, %v621_v51  }
  0x70   : > { %508 = vmatmul.bf16.gmra.mxu0 %v1766_v52  ;;  %v332_v47 = vpop.permute.xlu2 %331  ;;  %v664_v52 = vld [vmem:[%s2700_s4 + $0x1f8] sm:$0xff] }
  0x76   : > { %792 = vperm.xlu2 %2052, %v626_v53   ;;  %v663_v53 = vld [vmem:[%s2700_s4 + $0x1f0] sm:$0xff] }
  0x77   : > { %787 = vperm.xlu1 %2051, %v625_v54   ;;  %782 = vperm.xlu0 %2050, %v624_v55  }
  0x7e   : > { %807 = vperm.xlu2 %2052, %v629_v56  }
  0x7f   : > { %802 = vperm.xlu1 %2051, %v628_v57   ;;  %797 = vperm.xlu0 %2050, %v627_v58  }
  0x80   : > { %513 = vmatmul.bf16.gmra.mxu0 %v1767_v59 }
  0x81   : > { %v307_v16 = vpop.permute.xlu0 %306  ;;  %v317_v29 = vpop.permute.xlu1 %316 }
  0x86   : > { %822 = vperm.xlu2 %2052, %v632_v60  }
  0x87   : > { %817 = vperm.xlu1 %2051, %v631_v61   ;;  %812 = vperm.xlu0 %2050, %v630_v62  }
  0x89   : > { %v312_v22 = vpop.permute.xlu0 %311  ;;  %v322_v34 = vpop.permute.xlu1 %321 }
  0x8e   : > { %837 = vperm.xlu2 %2052, %v635_v63  }
  0x8f   : > { %832 = vperm.xlu1 %2051, %v634_v0   ;;  %827 = vperm.xlu0 %2050, %v633_v1  }
  0x90   : > { %518 = vmatmul.bf16.gmra.mxu0 %v1768_v2  ;;  %v347_v2 = vpop.permute.xlu2 %346 }
  0x91   : > { %v342_v55 = vpop.permute.xlu1 %341  ;;  %v337_v56 = vpop.permute.xlu0 %336 }
  0x96   : > { %852 = vperm.xlu2 %2052, %v638_v3  }
  0x97   : > { %847 = vperm.xlu1 %2051, %v637_v4   ;;  %842 = vperm.xlu0 %2050, %v636_v5  }
  0x98   : > { %v362_v5 = vpop.permute.xlu2 %361 }
  0x99   : > { %v352_v3 = vpop.permute.xlu0 %351 }
  0x9e   : > { %867 = vperm.xlu2 %2052, %v641_v6  }
  0x9f   : > { %862 = vperm.xlu1 %2051, %v640_v7   ;;  %857 = vperm.xlu0 %2050, %v639_v8   ;;  %v357_v7 = vpop.permute.xlu1 %356 }
  0xa0   : > { %523 = vmatmul.bf16.gmra.mxu0 %v1769_v9  ;;  %v377_v9 = vpop.permute.xlu2 %376 }
  0xa1   : > { %v367_v6 = vpop.permute.xlu0 %366 }
  0xa6   : > { %882 = vperm.xlu2 %2052, %v644_v10  }
  0xa7   : > { %877 = vperm.xlu1 %2051, %v643_v11   ;;  %872 = vperm.xlu0 %2050, %v642_v12  }
  0xa9   : > { %v382_v10 = vpop.permute.xlu0 %381 }
  0xad   : > { %v489_v17 = vpop.f32.mrf.mxu0 }
  0xae   : > { %897 = vperm.xlu2 %2052, %v647_v13   ;;  %v490_v18 = vadd.f32 %v489_v17, %v307_v16 }
  0xaf   : > { %892 = vperm.xlu1 %2051, %v646_v14   ;;  %887 = vperm.xlu0 %2050, %v645_v15   ;;  %v372_v14 = vpop.permute.xlu1 %371 }
  0xb5   : > { %v491_v23 = vpop.f32.mrf.mxu0 }
  0xb6   : > { %912 = vperm.xlu2 %2052, %v650_v19   ;;  %v492_v24 = vadd.f32 %v491_v23, %v312_v22 }
  0xb7   : > { %907 = vperm.xlu1 %2051, %v649_v20   ;;  %902 = vperm.xlu0 %2050, %v648_v21  }
  0xb8   : > { %v2364_v25 = vpack.c.bf16 %v492_v24, %v490_v18 }
  0xbd   : > { %v494_v30 = vpop.f32.mrf.mxu0 }
  0xbe   : > { %927 = vperm.xlu2 %2052, %v653_v26   ;;  %v495_v36 = vadd.f32 %v494_v30, %v317_v29  ;;  %v2412_v26 = vpop.permute.xlu1 %667  ;;  %v1790_v29 = vld [vmem:[%s2699_s3 + $0x60] sm:$0xff]  ;;  %v1800_v30 = vld [vmem:[%s2699_s3 + $0xb0] sm:$0xff] }
  0xbf   : > { %922 = vperm.xlu1 %2051, %v652_v27   ;;  %917 = vperm.xlu0 %2050, %v651_v28   ;;  %v1778_v27 = vld [vmem:[%s2699_s3] sm:$0xff]  ;;  %v1780_v28 = vld [vmem:[%s2699_s3 + $0x10] sm:$0xff] }
  0xc5   : > { %v496_v35 = vpop.f32.mrf.mxu0 }
  0xc6   : > { %942 = vperm.xlu2 %2052, %v656_v31   ;;  %v497_v37 = vadd.f32 %v496_v35, %v322_v34  ;;  %v2438_v31 = vpop.permute.xlu1 %682 }
  0xc7   : > { %937 = vperm.xlu1 %2051, %v655_v32   ;;  %932 = vperm.xlu0 %2050, %v654_v33   ;;  %v2440_v32 = vpop.permute.xlu0 %677  ;;  %v2442_v33 = vpop.permute.xlu2 %672 }
  0xc8   : > { %v2384_v38 = vpack.c.bf16 %v497_v37, %v495_v36  ;;  %v1779_v36 = vld [vmem:[%s2699_s3 + $0x8] sm:$0xff] }
  0xc9   : > { %v1791_v37 = vld [vmem:[%s2699_s3 + $0x68] sm:$0xff] }
  0xcd   : > { %v499_v43 = vpop.f32.mrf.mxu0 }
  0xce   : > { %957 = vperm.xlu2 %2052, %v659_v39   ;;  %v500_v49 = vadd.f32 %v499_v43, %v327_v42  ;;  %v2444_v34 = vpop.permute.xlu1 %697  ;;  %v1782_v43 = vld [vmem:[%s2699_s3 + $0x20] sm:$0xff] }
  0xcf   : > { %952 = vperm.xlu1 %2051, %v658_v40   ;;  %947 = vperm.xlu0 %2050, %v657_v41   ;;  %v2446_v35 = vpop.permute.xlu0 %692  ;;  %v2460_v39 = vpop.permute.xlu2 %687 }
  0xd5   : > { %v501_v48 = vpop.f32.mrf.mxu0 }
  0xd6   : > { %972 = vperm.xlu2 %2052, %v662_v44   ;;  %v502_v50 = vadd.f32 %v501_v48, %v332_v47  ;;  %v2462_v40 = vpop.permute.xlu1 %712  ;;  %v1802_v47 = vld [vmem:[%s2699_s3 + $0xc0] sm:$0xff] }
  0xd7   : > { %967 = vperm.xlu1 %2051, %v661_v45   ;;  %962 = vperm.xlu0 %2050, %v660_v46   ;;  %v2464_v41 = vpop.permute.xlu0 %707  ;;  %v2466_v42 = vpop.permute.xlu2 %702  ;;  %v1792_v46 = vld [vmem:[%s2699_s3 + $0x70] sm:$0xff] }
  0xd8   : > { %v2404_v51 = vpack.c.bf16 %v502_v50, %v500_v49 }
  0xdd   : > { %v504_v54 = vpop.f32.mrf.mxu0 }
  0xde   : > { %v505_v58 = vadd.f32 %v504_v54, %v337_v56  ;;  %v2471_v44 = vpop.permute.xlu1 %727  ;;  %v1803_v54 = vld [vmem:[%s2699_s3 + $0xc8] sm:$0xff] }
  0xdf   : > { %982 = vperm.xlu1 %2051, %v664_v52   ;;  %977 = vperm.xlu0 %2050, %v663_v53   ;;  %v2473_v45 = vpop.permute.xlu0 %722  ;;  %v2481_v48 = vpop.permute.xlu2 %717  ;;  %v1783_v52 = vld [vmem:[%s2699_s3 + $0x28] sm:$0xff]  ;;  %v1793_v53 = vld [vmem:[%s2699_s3 + $0x78] sm:$0xff] }
  0xe5   : > { %v506_v57 = vpop.f32.mrf.mxu0 }
  0xe6   : > { %v507_v59 = vadd.f32 %v506_v57, %v342_v55  ;;  %v2483_v49 = vpop.permute.xlu1 %742 }
  0xe7   : > { %v2485_v50 = vpop.permute.xlu0 %737 }
  0xe8   : > { %v596_v60 = vpack.c.bf16 %v507_v59, %v505_v58 }
  0xed   : > { %v509_v61 = vpop.f32.mrf.mxu0 }
  0xee   : > { %v510_v23 = vadd.f32 %v509_v61, %v347_v2  ;;  %v2498_v55 = vpop.permute.xlu1 %757  ;;  %v1794_v61 = vld [vmem:[%s2699_s3 + $0x80] sm:$0xff] }
  0xef   : > { %v2500_v56 = vpop.permute.xlu0 %752 }
  0xf5   : > { %v511_v62 = vpop.f32.mrf.mxu0 }
  0xf6   : > { %v512_v21 = vadd.f32 %v511_v62, %v352_v3  ;;  %v2504_v58 = vpop.permute.xlu1 %772  ;;  %v1804_v62 = vld [vmem:[%s2699_s3 + $0xd0] sm:$0xff]  ;;  %v1785_v3 = vld [vmem:[%s2699_s3 + $0x38] sm:$0xff] }
  0xf7   : > { %v2506_v59 = vpop.permute.xlu0 %767 }
  0xf8   : > { %v597_v24 = vpack.c.bf16 %v512_v21, %v510_v23  ;;  %v1797_v21 = vld [vmem:[%s2699_s3 + $0x98] sm:$0xff] }
  0xfd   : > { %v514_v63 = vpop.f32.mrf.mxu0 }
  0xfe   : > { %v515_v20 = vadd.f32 %v514_v63, %v357_v7 }
 0x105   : > { %v516_v0 = vpop.f32.mrf.mxu0 }
 0x106   : > { %v517_v18 = vadd.f32 %v516_v0, %v362_v5  ;;  %v2519_v0 = vpop.permute.xlu1 %787  ;;  %v1805_v5 = vld [vmem:[%s2699_s3 + $0xd8] sm:$0xff] }
 0x108   : > { %v598_v22 = vpack.c.bf16 %v517_v18, %v515_v20  ;;  %v1787_v18 = vld [vmem:[%s2699_s3 + $0x48] sm:$0xff] }
 0x10d   : > { %v519_v1 = vpop.f32.mrf.mxu0 }
 0x10e   : > { %v520_v17 = vadd.f32 %v519_v1, %v367_v6  ;;  %v2521_v1 = vpop.permute.xlu0 %782  ;;  %v2534_v6 = vpop.permute.xlu1 %802 }
 0x115   : > { %v521_v4 = vpop.f32.mrf.mxu0 }
 0x116   : > { %v522_v15 = vadd.f32 %v521_v4, %v372_v14  ;;  %v1795_v4 = vld [vmem:[%s2699_s3 + $0x88] sm:$0xff]  ;;  %v2536_v7 = vpop.permute.xlu0 %797 }
 0x118   : > { %v599_v19 = vpack.c.bf16 %v522_v15, %v520_v17 }
 0x11d   : > { %v524_v8 = vpop.f32.mrf.mxu0 }
 0x11e   : > { %v525_v12 = vadd.f32 %v524_v8, %v377_v9  ;;  %v2538_v9 = vpop.permute.xlu1 %817 }
 0x125   : > { %v526_v11 = vpop.f32.mrf.mxu0 }
 0x126   : > { %v527_v13 = vadd.f32 %v526_v11, %v382_v10  ;;  %v2540_v10 = vpop.permute.xlu0 %812  ;;  %v1786_v11 = vld [vmem:[%s2699_s3 + $0x40] sm:$0xff]  ;;  %v2553_v15 = vpop.permute.xlu1 %832 }
 0x128   : > { %v600_v16 = vpack.c.bf16 %v527_v13, %v525_v12  ;;  %v1796_v12 = vld [vmem:[%s2699_s3 + $0x90] sm:$0xff]  ;;  %v1806_v13 = vld [vmem:[%s2699_s3 + $0xe0] sm:$0xff] }
 0x12a   : > { %1177 = vmatpush.bf16.msrb.mxu0 %v600_v16  ;;  %2001 = vmatpush.bf16.msra.mxu1 %v600_v16 }
 0x12b   : > { %2002 = vmatpush.bf16.msra.mxu2 %v600_v16  ;;  %2003 = vmatpush.bf16.msra.mxu3 %v600_v16 }
 0x12e   : > { %1178 = vmatpush.bf16.msrb.mxu0 %v599_v19  ;;  %2004 = vmatpush.bf16.msra.mxu1 %v599_v19  ;;  %v2555_v16 = vpop.permute.xlu0 %827 }
 0x12f   : > { %2005 = vmatpush.bf16.msra.mxu2 %v599_v19  ;;  %2006 = vmatpush.bf16.msra.mxu3 %v599_v19  ;;  %v2562_v19 = vpop.permute.xlu1 %847 }
 0x132   : > { %1179 = vmatpush.bf16.msrb.mxu0 %v598_v22  ;;  %2007 = vmatpush.bf16.msra.mxu1 %v598_v22 }
 0x133   : > { %2008 = vmatpush.bf16.msra.mxu2 %v598_v22  ;;  %2009 = vmatpush.bf16.msra.mxu3 %v598_v22  ;;  %v1807_v22 = vld [vmem:[%s2699_s3 + $0xe8] sm:$0xff] }
 0x136   : > { %1180 = vmatpush.bf16.msrb.mxu0 %v597_v24  ;;  %2010 = vmatpush.bf16.msra.mxu1 %v597_v24  ;;  %v2564_v20 = vpop.permute.xlu0 %842 }
 0x137   : > { %2011 = vmatpush.bf16.msra.mxu2 %v597_v24  ;;  %2012 = vmatpush.bf16.msra.mxu3 %v597_v24  ;;  %v2574_v24 = vpop.permute.xlu1 %862 }
 0x13a   : > { %1181 = vmatpush.bf16.msrb.mxu0 %v596_v60  ;;  %2013 = vmatpush.bf16.msra.mxu1 %v596_v60 }
 0x13b   : > { %2014 = vmatpush.bf16.msra.mxu2 %v596_v60  ;;  %2015 = vmatpush.bf16.msra.mxu3 %v596_v60  ;;  %v1784_v60 = vld [vmem:[%s2699_s3 + $0x30] sm:$0xff] }
 0x13e   : > { %1182 = vmatpush.bf16.msrb.mxu0 %v2404_v51  ;;  %2016 = vmatpush.bf16.msra.mxu1 %v2404_v51 }
 0x13f   : > { %2017 = vmatpush.bf16.msra.mxu2 %v2404_v51  ;;  %2018 = vmatpush.bf16.msra.mxu3 %v2404_v51  ;;  %v2487_v51 = vpop.permute.xlu2 %732 }
 0x142   : > { %1183 = vmatpush.bf16.msrb.mxu0 %v2384_v38  ;;  %2019 = vmatpush.bf16.msra.mxu1 %v2384_v38 }
 0x143   : > { %2020 = vmatpush.bf16.msra.mxu2 %v2384_v38  ;;  %2021 = vmatpush.bf16.msra.mxu3 %v2384_v38  ;;  %v1801_v38 = vld [vmem:[%s2699_s3 + $0xb8] sm:$0xff] }
 0x146   : > { %1184 = vmatpush.bf16.msrb.mxu0 %v2364_v25  ;;  %2022 = vmatpush.bf16.msra.mxu1 %v2364_v25 }
 0x147   : > { %2023 = vmatpush.bf16.msra.mxu2 %v2364_v25  ;;  %2024 = vmatpush.bf16.msra.mxu3 %v2364_v25  ;;  %v1781_v25 = vld [vmem:[%s2699_s3 + $0x18] sm:$0xff]  ;;  %v2502_v57 = vpop.permute.xlu2 %747 }
 0x149   : > { %1185 = vmatmul.bf16.vlgmr.msrb.gmra.mxu0 %v1778_v27  ;;  %1195 = vmatmul.bf16.vlgmr.msra.gmra.mxu1 %v1780_v28  ;;  %v2576_v27 = vpop.permute.xlu0 %857 }
 0x14a   : > { %1245 = vmatmul.bf16.vlgmr.msra.gmra.mxu2 %v1790_v29  ;;  %1295 = vmatmul.bf16.vlgmr.msra.gmra.mxu3 %v1800_v30  ;;  %v1788_v29 = vld [vmem:[%s2699_s3 + $0x50] sm:$0xff] }
 0x14f   : > { %v2517_v63 = vpop.permute.xlu2 %762 }
 0x157   : > { %v2523_v2 = vpop.permute.xlu2 %777 }
 0x159   : > { %1190 = vmatmul.bf16.gmra.mxu0 %v1779_v36  ;;  %1200 = vmatmul.bf16.gmra.mxu1 %v1781_v25  ;;  %v1798_v25 = vld [vmem:[%s2699_s3 + $0xa0] sm:$0xff] }
 0x15a   : > { %1250 = vmatmul.bf16.gmra.mxu2 %v1791_v37  ;;  %1300 = vmatmul.bf16.gmra.mxu3 %v1801_v38  ;;  %v1808_v37 = vld [vmem:[%s2699_s3 + $0xf0] sm:$0xff]  ;;  %v2589_v38 = vpop.permute.xlu1 %877 }
 0x15f   : > { %v793_v8 = vpop.permute.xlu2 %792 }
 0x167   : > { %v2551_v14 = vpop.permute.xlu2 %807 }
 0x169   : > { %1205 = vmatmul.bf16.gmra.mxu1 %v1782_v43  ;;  %v2591_v43 = vpop.permute.xlu0 %872 }
 0x16a   : > { %1255 = vmatmul.bf16.gmra.mxu2 %v1792_v46  ;;  %1305 = vmatmul.bf16.gmra.mxu3 %v1802_v47 }
 0x16f   : > { %v2557_v17 = vpop.permute.xlu2 %822 }
 0x177   : > { %v2572_v23 = vpop.permute.xlu2 %837 }
 0x179   : > { %1210 = vmatmul.bf16.gmra.mxu1 %v1783_v52 }
 0x17a   : > { %1260 = vmatmul.bf16.gmra.mxu2 %v1793_v53  ;;  %1310 = vmatmul.bf16.gmra.mxu3 %v1803_v54 }
 0x17f   : > { %v2578_v28 = vpop.permute.xlu2 %852 }
 0x189   : > { %1215 = vmatmul.bf16.gmra.mxu1 %v1784_v60 }
 0x18a   : > { %1265 = vmatmul.bf16.gmra.mxu2 %v1794_v61  ;;  %1315 = vmatmul.bf16.gmra.mxu3 %v1804_v62 }
 0x199   : > { %1220 = vmatmul.bf16.gmra.mxu1 %v1785_v3  ;;  %v2603_v3 = vpop.permute.xlu2 %867 }
 0x19a   : > { %1270 = vmatmul.bf16.gmra.mxu2 %v1795_v4  ;;  %1320 = vmatmul.bf16.gmra.mxu3 %v1805_v5 }
 0x1a9   : > { %1225 = vmatmul.bf16.gmra.mxu1 %v1786_v11  ;;  %v893_v11 = vpop.permute.xlu1 %892 }
 0x1aa   : > { %1275 = vmatmul.bf16.gmra.mxu2 %v1796_v12  ;;  %1325 = vmatmul.bf16.gmra.mxu3 %v1806_v13 }
 0x1b9   : > { %1230 = vmatmul.bf16.gmra.mxu1 %v1787_v18 }
 0x1ba   : > { %1280 = vmatmul.bf16.gmra.mxu2 %v1797_v21  ;;  %1330 = vmatmul.bf16.gmra.mxu3 %v1807_v22 }
 0x1c6   : > { %v1186_v30 = vpop.f32.mrf.mxu0  ;;  %v1196_v36 = vpop.f32.mrf.mxu1 }
 0x1c7   : > { %v1187_v54 = vadd.f32 %v1186_v30, %v2412_v26  ;;  %v1197_v60 = vadd.f32 %v1196_v36, %v2460_v39  ;;  %v888_v26 = vpop.permute.xlu0 %887  ;;  %v1799_v30 = vld [vmem:[%s2699_s3 + $0xa8] sm:$0xff]  ;;  %v1809_v36 = vld [vmem:[%s2699_s3 + $0xf8] sm:$0xff] }
 0x1c9   : > { %1235 = vmatmul.bf16.gmra.mxu1 %v1788_v29 }
 0x1ca   : > { %1285 = vmatmul.bf16.gmra.mxu2 %v1798_v25  ;;  %1335 = vmatmul.bf16.gmra.mxu3 %v1808_v37 }
 0x1cd   : > { %v1246_v46 = vpop.f32.mrf.mxu2  ;;  %v1296_v47 = vpop.f32.mrf.mxu3 }
 0x1ce   : > { %v1188_v52 = vpop.f32.mrf.mxu0  ;;  %v1198_v53 = vpop.f32.mrf.mxu1  ;;  %v1247_v12 = vadd.f32 %v1246_v46, %v2519_v0  ;;  %v1297_v13 = vadd.f32 %v1296_v47, %v888_v26 }
 0x1cf   : > { %v1189_v61 = vadd.f32 %v1188_v52, %v2442_v33  ;;  %v1199_v62 = vadd.f32 %v1198_v53, %v2446_v35  ;;  %v1789_v35 = vld [vmem:[%s2699_s3 + $0x58] sm:$0xff]  ;;  %v2617_v52 = vpop.permute.xlu2 %882 }
 0x1d1   : > { %v1813_v4 = vpack.c.bf16 %v1189_v61, %v1187_v54  ;;  %v1823_v5 = vpack.c.bf16 %v1199_v62, %v1197_v60 }
 0x1d3   : > { %1814 = vst [vmem:[%s2601_s8] sm:$0xff] %v1813_v4  }
 0x1d4   : > { %1971 = vst [vmem:[%s2601_s8 + $0x10] sm:$0xff] %v1823_v5  }
 0x1d5   : > { %v1248_v39 = vpop.f32.mrf.mxu2  ;;  %v1298_v33 = vpop.f32.mrf.mxu3 }
 0x1d6   : > { %v1249_v18 = vadd.f32 %v1248_v39, %v793_v8  ;;  %v1299_v21 = vadd.f32 %v1298_v33, %v893_v11  ;;  %v1191_v22 = vpop.f32.mrf.mxu0  ;;  %v1201_v29 = vpop.f32.mrf.mxu1 }
 0x1d7   : > { %v1192_v53 = vadd.f32 %v1191_v22, %v2440_v32  ;;  %v1202_v54 = vadd.f32 %v1201_v29, %v2444_v34  ;;  %v898_v5 = vpop.permute.xlu2 %897  ;;  %v903_v11 = vpop.permute.xlu0 %902 }
 0x1d8   : > { %v1873_v25 = vpack.c.bf16 %v1249_v18, %v1247_v12  ;;  %v1923_v37 = vpack.c.bf16 %v1299_v21, %v1297_v13 }
 0x1d9   : > { %1240 = vmatmul.bf16.gmra.mxu1 %v1789_v35 }
 0x1da   : > { %1981 = vst [vmem:[%s2601_s8 + $0x60] sm:$0xff] %v1873_v25   ;;  %1290 = vmatmul.bf16.gmra.mxu2 %v1799_v30  ;;  %1340 = vmatmul.bf16.gmra.mxu3 %v1809_v36  ;;  %v908_v36 = vpop.permute.xlu1 %907 }
 0x1db   : > { %1991 = vst [vmem:[%s2601_s8 + $0xb0] sm:$0xff] %v1923_v37  }
 0x1dd   : > { %v1251_v0 = vpop.f32.mrf.mxu2  ;;  %v1301_v8 = vpop.f32.mrf.mxu3 }
 0x1de   : > { %v1193_v46 = vpop.f32.mrf.mxu0  ;;  %v1203_v47 = vpop.f32.mrf.mxu1  ;;  %v1252_v33 = vadd.f32 %v1251_v0, %v2536_v7  ;;  %v1302_v32 = vadd.f32 %v1301_v8, %v898_v5 }
 0x1df   : > { %v1194_v60 = vadd.f32 %v1193_v46, %v2438_v31  ;;  %v1204_v61 = vadd.f32 %v1203_v47, %v2466_v42  ;;  %v913_v7 = vpop.permute.xlu2 %912  ;;  %v918_v5 = vpop.permute.xlu0 %917 }
 0x1e1   : > { %v1818_v62 = vpack.c.bf16 %v1194_v60, %v1192_v53  ;;  %v1828_v4 = vpack.c.bf16 %v1204_v61, %v1202_v54 }
 0x1e3   : > { %1970 = vst [vmem:[%s2601_s8 + $0x8] sm:$0xff] %v1818_v62  }
 0x1e4   : > { %1972 = vst [vmem:[%s2601_s8 + $0x18] sm:$0xff] %v1828_v4  }
 0x1e5   : > { %v1253_v26 = vpop.f32.mrf.mxu2  ;;  %v1303_v39 = vpop.f32.mrf.mxu3 }
 0x1e6   : > { %v1254_v34 = vadd.f32 %v1253_v26, %v2534_v6  ;;  %v1304_v35 = vadd.f32 %v1303_v39, %v903_v11  ;;  %v1206_v31 = vpop.f32.mrf.mxu1 }
 0x1e7   : > { %v1207_v22 = vadd.f32 %v1206_v31, %v2464_v41 }
 0x1e8   : > { %v1878_v12 = vpack.c.bf16 %v1254_v34, %v1252_v33  ;;  %v1928_v42 = vpack.c.bf16 %v1304_v35, %v1302_v32 }
 0x1ea   : > { %1982 = vst [vmem:[%s2601_s8 + $0x68] sm:$0xff] %v1878_v12  }
 0x1eb   : > { %1992 = vst [vmem:[%s2601_s8 + $0xb8] sm:$0xff] %v1928_v42  }
 0x1ed   : > { %v1256_v13 = vpop.f32.mrf.mxu2  ;;  %v1306_v18 = vpop.f32.mrf.mxu3 }
 0x1ee   : > { %v1208_v21 = vpop.f32.mrf.mxu1  ;;  %v1257_v37 = vadd.f32 %v1256_v13, %v2551_v14  ;;  %v1307_v0 = vadd.f32 %v1306_v18, %v908_v36  ;;  %v923_v14 = vpop.permute.xlu1 %922 }
 0x1ef   : > { %v1209_v29 = vadd.f32 %v1208_v21, %v2462_v40  ;;  %v933_v21 = vpop.permute.xlu0 %932 }
 0x1f1   : > { %v1833_v30 = vpack.c.bf16 %v1209_v29, %v1207_v22 }
 0x1f3   : > { %1973 = vst [vmem:[%s2601_s8 + $0x20] sm:$0xff] %v1833_v30  }
 0x1f5   : > { %v1258_v6 = vpop.f32.mrf.mxu2  ;;  %v1308_v25 = vpop.f32.mrf.mxu3 }
 0x1f6   : > { %v1259_v8 = vadd.f32 %v1258_v6, %v2540_v10  ;;  %v1309_v46 = vadd.f32 %v1308_v25, %v913_v7  ;;  %v1211_v47 = vpop.f32.mrf.mxu1 }
 0x1f7   : > { %v1212_v61 = vadd.f32 %v1211_v47, %v2481_v48 }
 0x1f8   : > { %v1883_v53 = vpack.c.bf16 %v1259_v8, %v1257_v37  ;;  %v1933_v54 = vpack.c.bf16 %v1309_v46, %v1307_v0 }
 0x1fa   : > { %1983 = vst [vmem:[%s2601_s8 + $0x70] sm:$0xff] %v1883_v53   ;;  %v938_v53 = vpop.permute.xlu1 %937 }
 0x1fb   : > { %1993 = vst [vmem:[%s2601_s8 + $0xc0] sm:$0xff] %v1933_v54  }
 0x1fd   : > { %v1261_v41 = vpop.f32.mrf.mxu2  ;;  %v1311_v40 = vpop.f32.mrf.mxu3 }
 0x1fe   : > { %v1213_v60 = vpop.f32.mrf.mxu1  ;;  %v1262_v26 = vadd.f32 %v1261_v41, %v2538_v9  ;;  %v1312_v39 = vadd.f32 %v1311_v40, %v918_v5  ;;  %v928_v9 = vpop.permute.xlu2 %927 }
 0x1ff   : > { %v1214_v62 = vadd.f32 %v1213_v60, %v2473_v45 }
 0x201   : > { %v1838_v4 = vpack.c.bf16 %v1214_v62, %v1212_v61 }
 0x203   : > { %1974 = vst [vmem:[%s2601_s8 + $0x28] sm:$0xff] %v1838_v4  }
 0x205   : > { %v1263_v10 = vpop.f32.mrf.mxu2  ;;  %v1313_v11 = vpop.f32.mrf.mxu3 }
 0x206   : > { %v1264_v33 = vadd.f32 %v1263_v10, %v2557_v17  ;;  %v1314_v32 = vadd.f32 %v1313_v11, %v923_v14  ;;  %v1216_v34 = vpop.f32.mrf.mxu1 }
 0x207   : > { %v1217_v42 = vadd.f32 %v1216_v34, %v2471_v44 }
 0x208   : > { %v1888_v35 = vpack.c.bf16 %v1264_v33, %v1262_v26  ;;  %v1938_v31 = vpack.c.bf16 %v1314_v32, %v1312_v39  ;;  %v948_v39 = vpop.permute.xlu0 %947 }
 0x20a   : > { %1984 = vst [vmem:[%s2601_s8 + $0x78] sm:$0xff] %v1888_v35  }
 0x20b   : > { %1994 = vst [vmem:[%s2601_s8 + $0xc8] sm:$0xff] %v1938_v31  }
 0x20d   : > { %v1266_v48 = vpop.f32.mrf.mxu2  ;;  %v1316_v45 = vpop.f32.mrf.mxu3 }
 0x20e   : > { %v1218_v12 = vpop.f32.mrf.mxu1  ;;  %v1267_v29 = vadd.f32 %v1266_v48, %v2555_v16  ;;  %v1317_v30 = vadd.f32 %v1316_v45, %v928_v9  ;;  %v943_v16 = vpop.permute.xlu2 %942 }
 0x20f   : > { %v1219_v13 = vadd.f32 %v1218_v12, %v2487_v51 }
 0x211   : > { %v1843_v18 = vpack.c.bf16 %v1219_v13, %v1217_v42 }
 0x213   : > { %1975 = vst [vmem:[%s2601_s8 + $0x30] sm:$0xff] %v1843_v18  }
 0x215   : > { %v1268_v17 = vpop.f32.mrf.mxu2  ;;  %v1318_v22 = vpop.f32.mrf.mxu3 }
 0x216   : > { %v1269_v7 = vadd.f32 %v1268_v17, %v2553_v15  ;;  %v1319_v36 = vadd.f32 %v1318_v22, %v933_v21  ;;  %v1221_v6 = vpop.f32.mrf.mxu1  ;;  %v963_v21 = vpop.permute.xlu0 %962 }
 0x217   : > { %v1222_v8 = vadd.f32 %v1221_v6, %v2485_v50 }
 0x218   : > { %v1893_v25 = vpack.c.bf16 %v1269_v7, %v1267_v29  ;;  %v1943_v37 = vpack.c.bf16 %v1319_v36, %v1317_v30 }
 0x21a   : > { %1985 = vst [vmem:[%s2601_s8 + $0x80] sm:$0xff] %v1893_v25  }
 0x21b   : > { %1995 = vst [vmem:[%s2601_s8 + $0xd0] sm:$0xff] %v1943_v37  }
 0x21d   : > { %v1271_v44 = vpop.f32.mrf.mxu2  ;;  %v1321_v51 = vpop.f32.mrf.mxu3 }
 0x21e   : > { %v1223_v0 = vpop.f32.mrf.mxu1  ;;  %v1272_v41 = vadd.f32 %v1271_v44, %v2572_v23  ;;  %v1322_v40 = vadd.f32 %v1321_v51, %v938_v53  ;;  %v953_v23 = vpop.permute.xlu1 %952 }
 0x21f   : > { %v1224_v46 = vadd.f32 %v1223_v0, %v2483_v49 }
 0x221   : > { %v1848_v47 = vpack.c.bf16 %v1224_v46, %v1222_v8 }
 0x223   : > { %1976 = vst [vmem:[%s2601_s8 + $0x38] sm:$0xff] %v1848_v47  }
 0x225   : > { %v1273_v15 = vpop.f32.mrf.mxu2  ;;  %v1323_v54 = vpop.f32.mrf.mxu3 }
 0x226   : > { %v1274_v60 = vadd.f32 %v1273_v15, %v2564_v20  ;;  %v1324_v61 = vadd.f32 %v1323_v54, %v943_v16  ;;  %v1226_v62 = vpop.f32.mrf.mxu1  ;;  %v968_v8 = vpop.permute.xlu1 %967 }
 0x227   : > { %v1227_v10 = vadd.f32 %v1226_v62, %v2502_v57 }
 0x228   : > { %v1898_v4 = vpack.c.bf16 %v1274_v60, %v1272_v41  ;;  %v1948_v14 = vpack.c.bf16 %v1324_v61, %v1322_v40 }
 0x22a   : > { %1986 = vst [vmem:[%s2601_s8 + $0x88] sm:$0xff] %v1898_v4  }
 0x22b   : > { %1996 = vst [vmem:[%s2601_s8 + $0xd8] sm:$0xff] %v1948_v14   ;;  %v978_v14 = vpop.permute.xlu0 %977 }
 0x22d   : > { %v1276_v50 = vpop.f32.mrf.mxu2  ;;  %v1326_v49 = vpop.f32.mrf.mxu3 }
 0x22e   : > { %v1228_v5 = vpop.f32.mrf.mxu1  ;;  %v1277_v32 = vadd.f32 %v1276_v50, %v2562_v19  ;;  %v1327_v34 = vadd.f32 %v1326_v49, %v948_v39  ;;  %v958_v19 = vpop.permute.xlu2 %957 }
 0x22f   : > { %v1229_v11 = vadd.f32 %v1228_v5, %v2500_v56 }
 0x231   : > { %v1853_v26 = vpack.c.bf16 %v1229_v11, %v1227_v10 }
 0x233   : > { %1977 = vst [vmem:[%s2601_s8 + $0x40] sm:$0xff] %v1853_v26  }
 0x235   : > { %v1278_v20 = vpop.f32.mrf.mxu2  ;;  %v1328_v33 = vpop.f32.mrf.mxu3 }
 0x236   : > { %v1279_v35 = vadd.f32 %v1278_v20, %v2578_v28  ;;  %v1329_v31 = vadd.f32 %v1328_v33, %v953_v23  ;;  %v1231_v48 = vpop.f32.mrf.mxu1 }
 0x237   : > { %v1232_v13 = vadd.f32 %v1231_v48, %v2498_v55 }
 0x238   : > { %v1903_v45 = vpack.c.bf16 %v1279_v35, %v1277_v32  ;;  %v1953_v12 = vpack.c.bf16 %v1329_v31, %v1327_v34 }
 0x23a   : > { %1987 = vst [vmem:[%s2601_s8 + $0x90] sm:$0xff] %v1903_v45  }
 0x23b   : > { %1997 = vst [vmem:[%s2601_s8 + $0xe0] sm:$0xff] %v1953_v12  }
 0x23d   : > { %v1281_v57 = vpop.f32.mrf.mxu2  ;;  %v1331_v56 = vpop.f32.mrf.mxu3 }
 0x23e   : > { %v1233_v42 = vpop.f32.mrf.mxu1  ;;  %v1282_v22 = vadd.f32 %v1281_v57, %v2576_v27  ;;  %v1332_v29 = vadd.f32 %v1331_v56, %v958_v19  ;;  %v973_v27 = vpop.permute.xlu2 %972 }
 0x23f   : > { %v1234_v18 = vadd.f32 %v1233_v42, %v2517_v63 }
 0x241   : > { %v1858_v9 = vpack.c.bf16 %v1234_v18, %v1232_v13 }
 0x243   : > { %1978 = vst [vmem:[%s2601_s8 + $0x48] sm:$0xff] %v1858_v9  }
 0x245   : > { %v1283_v28 = vpop.f32.mrf.mxu2  ;;  %v1333_v17 = vpop.f32.mrf.mxu3 }
 0x246   : > { %v1284_v30 = vadd.f32 %v1283_v28, %v2574_v24  ;;  %v1334_v7 = vadd.f32 %v1333_v17, %v963_v21  ;;  %v1236_v36 = vpop.f32.mrf.mxu1 }
 0x247   : > { %v1237_v44 = vadd.f32 %v1236_v36, %v2506_v59 }
 0x248   : > { %v1908_v6 = vpack.c.bf16 %v1284_v30, %v1282_v22  ;;  %v1958_v25 = vpack.c.bf16 %v1334_v7, %v1332_v29 }
 0x24a   : > { %1988 = vst [vmem:[%s2601_s8 + $0x98] sm:$0xff] %v1908_v6  }
 0x24b   : > { %1998 = vst [vmem:[%s2601_s8 + $0xe8] sm:$0xff] %v1958_v25  }
 0x24d   : > { %v1286_v55 = vpop.f32.mrf.mxu2  ;;  %v1336_v63 = vpop.f32.mrf.mxu3 }
 0x24e   : > { %v1238_v37 = vpop.f32.mrf.mxu1  ;;  %v1287_v47 = vadd.f32 %v1286_v55, %v2603_v3  ;;  %v1337_v16 = vadd.f32 %v1336_v63, %v968_v8  ;;  %v983_v3 = vpop.permute.xlu1 %982 }
 0x24f   : > { %v1239_v51 = vadd.f32 %v1238_v37, %v2504_v58 }
 0x251   : > { %v1863_v0 = vpack.c.bf16 %v1239_v51, %v1237_v44 }
 0x253   : > { %1979 = vst [vmem:[%s2601_s8 + $0x50] sm:$0xff] %v1863_v0  }
 0x255   : > { %v1288_v24 = vpop.f32.mrf.mxu2  ;;  %v1338_v46 = vpop.f32.mrf.mxu3 }
 0x256   : > { %v1289_v53 = vadd.f32 %v1288_v24, %v2591_v43  ;;  %v1339_v15 = vadd.f32 %v1338_v46, %v973_v27  ;;  %v1241_v54 = vpop.f32.mrf.mxu1 }
 0x257   : > { %v1242_v61 = vadd.f32 %v1241_v54, %v2523_v2 }
 0x258   : > { %v1913_v41 = vpack.c.bf16 %v1289_v53, %v1287_v47  ;;  %v1963_v40 = vpack.c.bf16 %v1339_v15, %v1337_v16 }
 0x25a   : > { %1989 = vst [vmem:[%s2601_s8 + $0xa0] sm:$0xff] %v1913_v41  }
 0x25b   : > { %1999 = vst [vmem:[%s2601_s8 + $0xf0] sm:$0xff] %v1963_v40  }
 0x25d   : > { %v1291_v59 = vpop.f32.mrf.mxu2  ;;  %v1341_v58 = vpop.f32.mrf.mxu3 }
 0x25e   : > { %v1243_v60 = vpop.f32.mrf.mxu1  ;;  %v1292_v49 = vadd.f32 %v1291_v59, %v2589_v38  ;;  %v1342_v5 = vadd.f32 %v1341_v58, %v978_v14 }
 0x25f   : > { %v1244_v62 = vadd.f32 %v1243_v60, %v2521_v1 }
 0x261   : > { %v1868_v4 = vpack.c.bf16 %v1244_v62, %v1242_v61 }
 0x263   : > { %1980 = vst [vmem:[%s2601_s8 + $0x58] sm:$0xff] %v1868_v4  }
 0x265   : > { %v1293_v43 = vpop.f32.mrf.mxu2  ;;  %v1343_v50 = vpop.f32.mrf.mxu3 }
 0x266   : > { %v1294_v10 = vadd.f32 %v1293_v43, %v2617_v52  ;;  %v1344_v11 = vadd.f32 %v1343_v50, %v983_v3 }
 0x268   : > { %v1918_v26 = vpack.c.bf16 %v1294_v10, %v1292_v49  ;;  %v1968_v23 = vpack.c.bf16 %v1344_v11, %v1342_v5 }
 0x26a   : > { %1990 = vst [vmem:[%s2601_s8 + $0xa8] sm:$0xff] %v1918_v26  }
 0x26b   : > { %2000 = vst [vmem:[%s2601_s8 + $0xf8] sm:$0xff] %v1968_v23  }
 0x26c PF: > { %s15_s20 = sadd.s32 1, %s2075_s20   ;;  %s2702_s18 = smov %s2071_s19 }
 0x26d   : > { %p12_p5 = scmp.ge.s32.totalorder %s15_s20, 4   ;;  %s2703_s19 = smov %s2705_s21 }
 0x26f   :  { %14 = sbr.rel (!%p12_p5) target bundleno = 2 (0x2), region = 70 }

</bundles_post_ra>
